<compile_context>
chip_gen: v5e
topology: v5e:2x2
jax: 0.10.0
libtpu: 0.0.40
codegen_flags: <defaults>
</compile_context>

<pallas_src>
import functools

import jax
import jax.numpy as jnp
from jax.experimental import pallas as pl
from jax.experimental.pallas import tpu as pltpu

LANES = 128
_VMEM_LIMIT = 32 * 1024 * 1024  # explicit scoped-VMEM budget (safe on v5e/v6e/v7x)


def _round_up(x, m):
    return ((x + m - 1) // m) * m


def _row_tile(n_rows_padded, target=256):
    """Row tile: as large as `target` for DMA efficiency, but keep >= 2 grid
    steps when the problem allows it (so v7x can shard across its 2 TCs).
    Always a multiple of 8 (sublane alignment)."""
    t = min(target, n_rows_padded)
    if n_rows_padded // t < 2:
        t = max(8, (n_rows_padded // 2) // 8 * 8)
    return t


# ---------------------------------------------------------------------------
# Kernel 1:  support = X @ W        (row-tiled over X; W fully resident)
# ---------------------------------------------------------------------------
def _matmul_kernel(x_ref, w_ref, out_ref):
    out_ref[...] = jnp.dot(
        x_ref[...], w_ref[...], preferred_element_type=jnp.float32
    ).astype(out_ref.dtype)


def dense_matmul(x, w, *, out_dtype, row_tile):
    n, d = x.shape
    f = w.shape[1]
    assert n % row_tile == 0
    bytes_accessed = int(
        x.size * x.dtype.itemsize
        + w.size * w.dtype.itemsize
        + n * f * jnp.dtype(out_dtype).itemsize
    )
    return pl.pallas_call(
        _matmul_kernel,
        out_shape=jax.ShapeDtypeStruct((n, f), out_dtype),
        grid=(n // row_tile,),
        in_specs=[
            pl.BlockSpec((row_tile, d), lambda i: (i, 0)),  # X row tile (streamed)
            pl.BlockSpec((d, f), lambda i: (0, 0)),         # full W (constant block)
        ],
        out_specs=pl.BlockSpec((row_tile, f), lambda i: (i, 0)),
        compiler_params=pltpu.CompilerParams(
            dimension_semantics=("parallel",),
            vmem_limit_bytes=_VMEM_LIMIT,
        ),
        cost_estimate=pl.CostEstimate(
            flops=2 * n * d * f, transcendentals=0, bytes_accessed=bytes_accessed
        ),
    )(x, w)


# ---------------------------------------------------------------------------
# Kernel 2:  out = A @ support + b  (+ optional ReLU), row-tiled over A
# ---------------------------------------------------------------------------
def _aggregate_kernel(adj_ref, s_ref, b_ref, out_ref, *, apply_relu):
    out = jnp.dot(adj_ref[...], s_ref[...], preferred_element_type=jnp.float32)
    out = out + b_ref[...]  # bias [1, F] broadcasts over rows (fp32)
    if apply_relu:
        out = jnp.maximum(out, 0.0)
    out_ref[...] = out.astype(out_ref.dtype)


def aggregate(adj, support, bias, *, apply_relu, out_dtype, row_tile):
    n = adj.shape[0]
    f = support.shape[1]
    assert adj.shape == (n, n) and n % row_tile == 0
    kernel = functools.partial(_aggregate_kernel, apply_relu=apply_relu)
    bytes_accessed = int(
        adj.size * adj.dtype.itemsize
        + support.size * support.dtype.itemsize
        + bias.size * bias.dtype.itemsize
        + n * f * jnp.dtype(out_dtype).itemsize
    )
    return pl.pallas_call(
        kernel,
        out_shape=jax.ShapeDtypeStruct((n, f), out_dtype),
        grid=(n // row_tile,),
        in_specs=[
            pl.BlockSpec((row_tile, n), lambda i: (i, 0)),  # A row tile (streamed)
            pl.BlockSpec((n, f), lambda i: (0, 0)),         # full support (constant)
            pl.BlockSpec((1, f), lambda i: (0, 0)),         # bias (constant)
        ],
        out_specs=pl.BlockSpec((row_tile, f), lambda i: (i, 0)),
        compiler_params=pltpu.CompilerParams(
            dimension_semantics=("parallel",),
            vmem_limit_bytes=_VMEM_LIMIT,
        ),
        cost_estimate=pl.CostEstimate(
            flops=2 * n * n * f, transcendentals=0, bytes_accessed=bytes_accessed
        ),
    )(adj, support, bias)


# ---------------------------------------------------------------------------
# Full network
# ---------------------------------------------------------------------------
def gcn_net(adj, feature, params, *, compute_dtype=jnp.bfloat16, row_tile_target=256):
    """GcnNet.forward: h = relu(A @ (X@W1) + b1); logits = A @ (h@W2) + b2.

    Streams A / X / h / W in `compute_dtype` (fp32 accumulation on the MXU),
    pads feature/class dims to 128 lanes and rows to the row tile, and slices
    the padding off the returned logits.
    """
    w1, b1, w2, b2 = params
    n, d = feature.shape
    hid, cls = w1.shape[1], w2.shape[1]
    assert adj.shape == (n, n) and w2.shape[0] == hid

    # padded sizes
    n8 = _round_up(n, 8)
    tn = _row_tile(n8, row_tile_target)
    np_ = _round_up(n8, tn)
    hid_p = _round_up(hid, LANES)
    cls_p = _round_up(cls, LANES)

    cdt = jnp.dtype(compute_dtype)

    adj_p = jnp.zeros((np_, np_), cdt).at[:n, :n].set(adj.astype(cdt))
    x_p = jnp.zeros((np_, d), cdt).at[:n, :].set(feature.astype(cdt))
    w1_p = jnp.zeros((d, hid_p), cdt).at[:, :hid].set(w1.astype(cdt))
    b1_p = jnp.zeros((1, hid_p), jnp.float32).at[:, :hid].set(
        b1.reshape(1, hid).astype(jnp.float32))
    w2_p = jnp.zeros((hid_p, cls_p), cdt).at[:hid, :cls].set(w2.astype(cdt))
    b2_p = jnp.zeros((1, cls_p), jnp.float32).at[:, :cls].set(
        b2.reshape(1, cls).astype(jnp.float32))

    # layer 1: h = relu(A @ (X @ W1) + b1)
    support1 = dense_matmul(x_p, w1_p, out_dtype=cdt, row_tile=tn)
    h = aggregate(adj_p, support1, b1_p, apply_relu=True, out_dtype=cdt, row_tile=tn)

    # layer 2: logits = A @ (h @ W2) + b2
    support2 = dense_matmul(h, w2_p, out_dtype=cdt, row_tile=tn)
    logits_p = aggregate(adj_p, support2, b2_p, apply_relu=False,
                         out_dtype=jnp.float32, row_tile=tn)

    return logits_p[:n, :cls]


# ---------------------------------------------------------------------------
# Parameter / data construction (deterministic, matching the PyTorch module)
# ---------------------------------------------------------------------------
def kaiming_uniform(key, shape):
    # Mimic torch.nn.init.kaiming_uniform_ on a (in_dim, out_dim) 2-D tensor:
    # torch's fan_in = tensor.size(1), gain = sqrt(2), bound = gain*sqrt(3/fan_in).
    fan_in = shape[1]
    bound = jnp.sqrt(2.0) * jnp.sqrt(3.0 / fan_in)
    return jax.random.uniform(key, shape, jnp.float32, -bound, bound)


def make_params(key, input_dim, hidden_dim=16, out_dim=7):
    k1, k2 = jax.random.split(key)
    w1 = kaiming_uniform(k1, (input_dim, hidden_dim))
    b1 = jnp.zeros((1, hidden_dim), jnp.float32)
    w2 = kaiming_uniform(k2, (hidden_dim, out_dim))
    b2 = jnp.zeros((1, out_dim), jnp.float32)
    return w1, b1, w2, b2


def make_normalized_adjacency(key, n_nodes, density=0.1):
    # Dense symmetric normalized adjacency: D^{-1/2} (A + I) D^{-1/2}
    a = (jax.random.uniform(key, (n_nodes, n_nodes)) < density).astype(jnp.float32)
    a = jnp.maximum(a, a.T)
    a = a + jnp.eye(n_nodes, dtype=jnp.float32)
    deg = jnp.sum(a, axis=1)
    d_inv_sqrt = 1.0 / jnp.sqrt(deg)
    return a * d_inv_sqrt[:, None] * d_inv_sqrt[None, :]


if __name__ == "__main__":
    N_NODES = 128     # number of graph nodes
    INPUT_DIM = 64    # small stand-in for the default 1433
    HIDDEN = 16
    CLASSES = 7

    key = jax.random.PRNGKey(0)
    k_adj, k_feat, k_params = jax.random.split(key, 3)

    adjacency = make_normalized_adjacency(k_adj, N_NODES)
    feature = jax.random.normal(k_feat, (N_NODES, INPUT_DIM), jnp.float32)
    params = make_params(k_params, INPUT_DIM, HIDDEN, CLASSES)

    # Pure-JAX reference of the exact forward semantics (fp32).
    w1, b1, w2, b2 = params
    h_ref = jnp.maximum(adjacency @ (feature @ w1) + b1, 0.0)
    logits_ref = adjacency @ (h_ref @ w2) + b2

    # fp32 streaming path: tight check against the reference.
    logits_f32 = jax.block_until_ready(
        gcn_net(adjacency, feature, params, compute_dtype=jnp.float32))
    assert logits_f32.shape == (N_NODES, CLASSES)
    assert jnp.allclose(logits_f32, logits_ref, atol=1e-4, rtol=1e-4)

    # default bf16-streamed path (fp32 accumulation): looser tolerance.
    logits_bf16 = jax.block_until_ready(gcn_net(adjacency, feature, params))
    assert logits_bf16.shape == (N_NODES, CLASSES)
    assert jnp.allclose(logits_bf16, logits_ref, atol=5e-2, rtol=5e-2)

    print("KERNEL_OK")
</pallas_src>

<mosaic_0001>
module attributes {stable_mosaic.version = 11 : i64} {
  func.func @_matmul_kernel(%arg0: i32, %arg1: memref<64x64xf32, #tpu.memory_space<vmem>>, %arg2: memref<64x128xf32, #tpu.memory_space<vmem>>, %arg3: memref<64x128xf32, #tpu.memory_space<vmem>>) attributes {dimension_semantics = [#tpu.dimension_semantics<parallel>], iteration_bounds = array<i64: 2>, scalar_prefetch = 0 : i64, scratch_operands = 0 : i64, tpu.core_type = #tpu.core_type<tc>, window_params = [{transform_indices = @transform_0, window_bounds = array<i64: 64, 64>}, {pipeline_mode = #tpu.pipeline_mode<synchronous>, transform_indices = @transform_1, window_bounds = array<i64: 64, 128>}, {transform_indices = @transform_2, window_bounds = array<i64: 64, 128>}]} {
    %c0 = arith.constant 0 : index
    %c0_0 = arith.constant 0 : index
    %0 = vector.load %arg1[%c0, %c0_0] : memref<64x64xf32, #tpu.memory_space<vmem>>, vector<64x64xf32>
    %c0_1 = arith.constant 0 : index
    %c0_2 = arith.constant 0 : index
    %1 = vector.load %arg2[%c0_1, %c0_2] : memref<64x128xf32, #tpu.memory_space<vmem>>, vector<64x128xf32>
    %cst = arith.constant dense<0.000000e+00> : vector<64x128xf32>
    %2 = tpu.matmul %0, %1, %cst {dimension_numbers = #tpu.dot_dimension_numbers<[1], [0], [0], [1], [0, 0, 1, 1], [], []>} : vector<64x64xf32>, vector<64x128xf32>, vector<64x128xf32> -> vector<64x128xf32>
    %c0_3 = arith.constant 0 : index
    %c0_4 = arith.constant 0 : index
    %3 = vector.load %arg3[%c0_3, %c0_4] : memref<64x128xf32, #tpu.memory_space<vmem>>, vector<64x128xf32>
    tpu.vector_store %arg3[%c0_3, %c0_4], %2 {strides = array<i32>} : memref<64x128xf32, #tpu.memory_space<vmem>>, vector<64x128xf32>,
    return
  }
  func.func @transform_0(%arg0: i32) -> (i32, i32) {
    %c0_i32 = arith.constant 0 : i32
    %c0_i32_0 = arith.constant 0 : i32
    return %arg0, %c0_i32 : i32, i32
  }
  func.func @transform_1(%arg0: i32) -> (i32, i32) {
    %c0_i32 = arith.constant 0 : i32
    %c0_i32_0 = arith.constant 0 : i32
    %c0_i32_1 = arith.constant 0 : i32
    return %c0_i32, %c0_i32_0 : i32, i32
  }
  func.func @transform_2(%arg0: i32) -> (i32, i32) {
    %c0_i32 = arith.constant 0 : i32
    %c0_i32_0 = arith.constant 0 : i32
    return %arg0, %c0_i32 : i32, i32
  }
}

</mosaic_0001>

<bundles_post_ra>
// kernel: tpu_custom_call.1
= control target key start
LH: loop header
LB: loop body
LE: loop exit
PB: predicated region body
PF: predicated region fallthrough
CT: control target
= control target key end

     0   :  { %7 = vsyncpa [#allocation3], 0  ;;  %s596_s0 = inlined_call_operand.vmem [shape: f32[128,64], index: 0, kind: input, shape index: {}]   ;;  %s597_s1 = inlined_call_operand.vmem [shape: f32[64,128], index: 1, kind: input, shape index: {}]   ;;  %s598_s2 = inlined_call_operand.hbm [shape: f32[128,128], index: 2, kind: output, shape index: {}]  }
   0x1   :  { %9 = vsyncpa [#allocation3 + $0x1], 0  ;;  %s480_s9 = smov 0   ;;  %s482_s10 = smov 0  }
   0x2   :  { %s484_s11 = smov 0   ;;  %s486_s12 = smov 0  }
   0x3 LB: > { %s501_s13 = sadd.s32 4294967295, %s461_s12   ;;  %s313_s14 = sadd.s32 4294967294, %s461_s12   ;;  %s461_s12 = sphi %s486_s12, %s604_s12   ;;  %s457_s11 = sphi %s484_s11, %s603_s11   ;;  %s453_s10 = sphi %s482_s10, %s602_s10   ;;  %s449_s9 = sphi %s480_s9, %s601_s9  }
   0x4   : > { %s505_s15 = sadd.s32 1, %s461_s12   ;;  %s69_s16 = sadd.s32 1, %s457_s11 }
   0x5   : > { %s66_s17 = ssub.s32 %s461_s12, %s505_s15  ;;  %p79_p0 = scmp.ne.s32.totalorder %s457_s11, %s453_s10 }
   0x6   : > { %p67_p1 = scmp.eq.s32.totalorder %s66_s17, 0  ;;  %p80_p2 = scmp.eq.s32.totalorder %s501_s13, 1 }
   0x7   : > { %p85_p3 = scmp.ne.s32.totalorder %s453_s10, %s449_s9  ;;  %p86_p4 = scmp.eq.s32.totalorder %s313_s14, 1 }
   0x8   : > { %s516_s18 = scalar_select %p67_p1, %s457_s11, %s69_s16  }
   0x9   : > { %p518_p5 = por %p80_p2, %p79_p0  ;;  %p522_p6 = por %p86_p4, %p85_p3 }
   0xa   : > { %p316_p7 = scmp.ge.s32.totalorder %s461_s12, 1  ;;  %p116_p8 = scmp.lt.s32.totalorder %s461_s12, 3 }
   0xc   : > { %p117_p9 = pnand %p316_p7, %p116_p8 }
   0xd   : > { %s318_s25 = sshll.u32 (!%p117_p9), %s501_s13, 3  ;;  %s135_s23 = sand.u32 (!%p117_p9), 1, %s453_s10  }
   0xe   : > { %120 = sbr.rel (%p117_p9) target bundleno = 180 (0xb4), region = 28  ;;  %p139_p10 = scmp.lt.s32.totalorder (!%p117_p9), %s318_s25, 15 }
   0xf   : > { %s317_s24 = sshll.u32 (!%p117_p9), %s135_s23, 6  ;;  %s333_s26 = sshll.u32 (!%p117_p9), %s501_s13, 6 }
  0x10   : > { %s247_s29 = scalar_lea.hbm (!%p117_p9), %s598_s2, %s333_s26  ;;  %s236_s13 = scalar_lea.sflag (!%p117_p9), [#allocation3], %s135_s23 }
  0x11   : > { %s250_s3 = sshll.u32 (!%p117_p9), %s247_s29, 4  ;;  %s419_s8 = scalar_lea.hbm (!%p117_p9), %s598_s2, 128  ;;  %s251_s3 = int_to_ptr.hbm [resolvable:$true] %s250_s3 }
  0x13   : > { %v160_v0 = vld [vmem:[%s597_s1 + $0x38] sm:$0xff]  ;;  %v159_v1 = vld [vmem:[%s597_s1 + $0x30] sm:$0xff]  ;;  %v158_v2 = vld [vmem:[%s597_s1 + $0x28] sm:$0xff]  ;;  %s606_s25 = smov (!%p139_p10, %s318_s25), 15  ;;  %vm161_vm0 = vcmask 523264  }
  0x14   : > { %335 = vmatpush.msra.mxu2 %v160_v0  ;;  %336 = vmatpush.msra.mxu3 %v160_v0  ;;  %v157_v3 = vld [vmem:[%s597_s1 + $0x20] sm:$0xff]  ;;  %v156_v4 = vld [vmem:[%s597_s1 + $0x18] sm:$0xff]  ;;  %s319_s4 = sshll.u32 %s606_s25, 3  ;;  %v155_v5 = vld [vmem:[%s597_s1 + $0x10] sm:$0xff]  ;;  %s137_s25 = scalar_lea.vmem [#allocation2], %s317_s24 }
  0x15   : > { %194 = vmatpush.msra.mxu0 %v160_v0  ;;  %334 = vmatpush.msra.mxu1 %v160_v0  ;;  %v154_v6 = vld [vmem:[%s597_s1 + $0x8] sm:$0xff]  ;;  %s142_s17 = scalar_lea.vmem %s596_s0, %s319_s4  ;;  %v153_v7 = vld [vmem:[%s597_s1] sm:$0xff]  ;;  %s248_s30 = sshll.u32 %s137_s25, 4  ;;  %s249_s30 = int_to_ptr.vmem [resolvable:$true] %s248_s30 }
  0x16   : > { %338 = vmatpush.msra.mxu2 %v159_v1  ;;  %339 = vmatpush.msra.mxu3 %v159_v1  ;;  %v149_v8 = vld [vmem:[%s142_s17 + $0x20] sm:$0xff]  ;;  %v151_v9 = vld [vmem:[%s142_s17 + $0x30] sm:$0xff]  ;;  %v150_v12 = vld [vmem:[%s142_s17 + $0x28] sm:$0xff]  ;;  %s413_s4 = sshra.s32 %s251_s3, 4  ;;  %s414_s4 = int_to_ptr.hbm [resolvable:$true] %s413_s4 }
  0x17   : > { %195 = vmatpush.msra.mxu0 %v159_v1  ;;  %337 = vmatpush.msra.mxu1 %v159_v1  ;;  %v145_v10 = vld [vmem:[%s142_s17] sm:$0xff]  ;;  %v147_v11 = vld [vmem:[%s142_s17 + $0x10] sm:$0xff]  ;;  %v152_v13 = vld [vmem:[%s142_s17 + $0x38] sm:$0xff]  ;;  %s415_s5 = scalar_lea.hbm %s414_s4, 64  ;;  %p420_p0 = scmp.lt.s32.totalorder %s414_s4, %s598_s2 }
  0x18   : > { %341 = vmatpush.msra.mxu2 %v158_v2  ;;  %342 = vmatpush.msra.mxu3 %v158_v2  ;;  %v146_v14 = vld [vmem:[%s142_s17 + $0x8] sm:$0xff]  ;;  %v148_v15 = vld [vmem:[%s142_s17 + $0x18] sm:$0xff]  ;;  %p416_p11 = scmp.ne.s32.totalorder %s414_s4, %s415_s5  ;;  %p421_p1 = scmp.lt.s32.totalorder %s419_s8, %s415_s5 }
  0x19   : > { %196 = vmatpush.msra.mxu0 %v158_v2  ;;  %340 = vmatpush.msra.mxu1 %v158_v2 }
  0x1a   : > { %344 = vmatpush.msra.mxu2 %v157_v3  ;;  %345 = vmatpush.msra.mxu3 %v157_v3  ;;  %p417_p12 = pnand %p416_p11, %p518_p5  ;;  %p422_p2 = por %p421_p1, %p420_p0 }
  0x1b   : > { %197 = vmatpush.msra.mxu0 %v157_v3  ;;  %343 = vmatpush.msra.mxu1 %v157_v3 }
  0x1c   : > { %347 = vmatpush.msra.mxu2 %v156_v4  ;;  %348 = vmatpush.msra.mxu3 %v156_v4  ;;  %p418_p13 = pneg %p417_p12 }
  0x1d   : > { %198 = vmatpush.msra.mxu0 %v156_v4  ;;  %346 = vmatpush.msra.mxu1 %v156_v4 }
  0x1e   : > { %350 = vmatpush.msra.mxu2 %v155_v5  ;;  %351 = vmatpush.msra.mxu3 %v155_v5  ;;  %p423_p3 = pnand %p422_p2, %p418_p13 }
  0x1f   : > { %199 = vmatpush.msra.mxu0 %v155_v5  ;;  %349 = vmatpush.msra.mxu1 %v155_v5 }
  0x20   : > { %353 = vmatpush.msra.mxu2 %v154_v6  ;;  %354 = vmatpush.msra.mxu3 %v154_v6 }
  0x21   : > { %200 = vmatpush.msra.mxu0 %v154_v6  ;;  %352 = vmatpush.msra.mxu1 %v154_v6 }
  0x22   : > { %356 = vmatpush.msra.mxu2 %v153_v7  ;;  %357 = vmatpush.msra.mxu3 %v153_v7 }
  0x23   : > { %324 = vmatmul.msk.f32.vlgmr.msra.gmra.mxu2 %vm161_vm0, %v149_v8  ;;  %326 = vmatmul.msk.f32.vlgmr.msra.gmra.mxu3 %vm161_vm0, %v151_v9 }
  0x24   : > { %201 = vmatpush.msra.mxu0 %v153_v7  ;;  %355 = vmatpush.msra.mxu1 %v153_v7 }
  0x25   : > { %320 = vmatmul.msk.f32.vlgmr.msra.gmra.mxu0 %vm161_vm0, %v145_v10  ;;  %322 = vmatmul.msk.f32.vlgmr.msra.gmra.mxu1 %vm161_vm0, %v147_v11 }
  0x2b   : > { %325 = vmatmul.msk.f32.gmra.mxu2 %vm161_vm0, %v150_v12  ;;  %327 = vmatmul.msk.f32.gmra.mxu3 %vm161_vm0, %v152_v13 }
  0x2d   : > { %321 = vmatmul.msk.f32.gmra.mxu0 %vm161_vm0, %v146_v14  ;;  %323 = vmatmul.msk.f32.gmra.mxu1 %vm161_vm0, %v148_v15 }
  0xa2   : > { %v203_v16 = vpop.f32.mrf.mxu0  ;;  %v209_v17 = vpop.f32.mrf.mxu1 }
  0xa3   : > { %227 = vst [vmem:[%s137_s25] sm:$0xff] %v203_v16 }
  0xa4   : > { %229 = vst [vmem:[%s137_s25 + $0x10] sm:$0xff] %v209_v17 }
  0xa6   : > { %v215_v18 = vpop.f32.mrf.mxu2  ;;  %v221_v19 = vpop.f32.mrf.mxu3 }
  0xa7   : > { %231 = vst [vmem:[%s137_s25 + $0x20] sm:$0xff] %v215_v18 }
  0xa8   : > { %233 = vst [vmem:[%s137_s25 + $0x30] sm:$0xff] %v221_v19 }
  0xaa   : > { %v206_v20 = vpop.f32.mrf.mxu0  ;;  %v212_v21 = vpop.f32.mrf.mxu1 }
  0xab   : > { %228 = vst [vmem:[%s137_s25 + $0x8] sm:$0xff] %v206_v20 }
  0xac   : > { %230 = vst [vmem:[%s137_s25 + $0x18] sm:$0xff] %v212_v21 }
  0xae   : > { %v218_v22 = vpop.f32.mrf.mxu2  ;;  %v224_v23 = vpop.f32.mrf.mxu3 }
  0xaf   : > { %232 = vst [vmem:[%s137_s25 + $0x28] sm:$0xff] %v218_v22 }
  0xb0   : > { %234 = vst [vmem:[%s137_s25 + $0x38] sm:$0xff] %v224_v23 }
  0xb1   : > { %426 = shalt.err (!%p423_p3)
}
  0xb2   : > { %s463_s17 = smov 128   ;;  %s464_s21 = smov 8  }
  0xb3   : > { %358 = dma.vmem_to_hbm [thread:$0]  (%p518_p5), %s249_s30, 1024, %s251_s3, %s236_s13, %s463_s17, %s463_s17, %s464_s21  }
  0xb4 PF: > { %p364_p4 = scmp.ge.s32.totalorder %s461_s12, 2  ;;  %s265_s22 = sand.u32 1, %s449_s9  }
  0xb5   : > { %s266_s23 = scalar_lea.sflag [#allocation3], %s265_s22 }
  0xb6   : > { %p361_p7 = pnand %p364_p4, %p522_p6 }
  0xb8   : > { %p362_p8 = pneg %p361_p7 }
  0xba   : > { %444 = dma.done.wait (%p362_p8), %s266_s23, 1024  }
  0xbb   : > { %446 = vsyncadd (%p362_p8), %s266_s23, 4294966272  ;;  %p12_p9 = scmp.ge.s32.totalorder %s505_s15, 4   ;;  %s601_s9 = smov %s453_s10 }
  0xbc   : > { %s602_s10 = smov %s457_s11  ;;  %s603_s11 = smov %s516_s18 }
  0xbd   : > { %s604_s12 = smov %s505_s15  ;;  %14 = sbr.rel (!%p12_p9) target bundleno = 3 (0x3), region = 63 }
  0xc2   :  { %272 = vsyncpa [#allocation3], 1 }
  0xc3   :  { %274 = vsyncpa [#allocation3 + $0x1], 1 }

</bundles_post_ra>
